<compile_context>
chip_gen: v7x
topology: tpu7x:2x2x1
jax: 0.10.0
libtpu: 0.0.40
codegen_flags: <defaults>
</compile_context>

<pallas_src>
import jax
import jax.numpy as jnp
from jax.experimental import pallas as pl
from jax.experimental.pallas import tpu as pltpu

_LANE = 128
_L_TILE_CAP = 4096            # lanes per contraction (L) step; multiple of 128


def _round_up(x, m):
    return ((x + m - 1) // m) * m


def _vmem_capacity_bytes():
    """Per-core VMEM capacity; conservative fallback when the query fails."""
    try:
        cap = getattr(pltpu.get_tpu_info(), "vmem_capacity_bytes", None)
        if cap:
            return int(cap)
    except Exception:
        pass
    return 64 * 1024 * 1024   # conservative (v7x per-TensorCore VMEM)


def _tile_bytes(rows, cols, dtype):
    """VMEM footprint of one (rows, cols) tile incl. (sublane, lane) padding."""
    itemsize = jnp.dtype(dtype).itemsize
    sublane = max(8, 32 // itemsize)            # 8 (f32) / 16 (bf16) / 32 (i8)
    return itemsize * _round_up(max(rows, 1), sublane) * _round_up(max(cols, 1), _LANE)


def _choose_batch_tile(n, per_batch_bytes, budget_bytes, two_tc):
    bt = max(1, min(n, budget_bytes // max(per_batch_bytes, 1)))
    if two_tc and n >= 2:
        bt = min(bt, -(-n // 2))                # >= 2 grid steps on 2-TC parts
    while n % bt:
        bt -= 1
    if two_tc and n % 2 == 0 and (n // bt) % 2:
        # Prefer an even number of grid steps (balanced work for both cores),
        # as long as it costs at most a 2x smaller batch tile.
        for cand in range(bt - 1, 0, -1):
            if n % cand == 0 and (n // cand) % 2 == 0 and 2 * cand >= bt:
                return cand
    return bt


def _attention_kernel(key_ref, query_ref, value_ref, out_ref, sim_acc):
    # key_ref:   (B, KC, TL)   query_ref: (B, QC, TL)
    # value_ref: (B, QC, Lv)   out_ref:   (B, KC, Lv)
    # sim_acc:   (B, KC, QC) f32 scratch, accumulated across the L grid axis.
    li = pl.program_id(1)

    @pl.when(li == 0)
    def _init():
        sim_acc[...] = jnp.zeros_like(sim_acc)

    # Partial sim = key @ query^T over this L tile.  Both operands are
    # lane-dense (L last); batched last-last contraction on the MXU, f32 acc.
    sim_acc[...] += jnp.einsum(
        "bkl,bql->bkq", key_ref[...], query_ref[...],
        preferred_element_type=jnp.float32)

    @pl.when(li == pl.num_programs(1) - 1)
    def _finalize():
        sim = sim_acc[...]                               # (B, KC, QC) f32
        v = value_ref[...]                               # (B, QC, Lv)
        # torch re-binds KC = value.shape[1] before scaling.
        scale = v.shape[1] ** -0.5
        # softmax over the KC axis (torch dim=1); scale folded into the exp
        # argument: softmax(s*x) == exp((x - max(x)) * s) / sum(...) for s > 0.
        m = jnp.max(sim, axis=1, keepdims=True)
        e = jnp.exp((sim - m) * scale)
        p = e / jnp.sum(e, axis=1, keepdims=True)        # exact f32 divide
        if v.dtype != jnp.float32:
            p = p.astype(v.dtype)                        # keep bf16 MXU path
        out = jnp.einsum("bkq,bqv->bkv", p, v,
                         preferred_element_type=jnp.float32)
        out_ref[...] = out.astype(out_ref.dtype)


@jax.jit
def attention_block(key, value, query):
    """TEHNet AttentionBlock forward.

    key:   (N, KC, H, W) or (N, KC, L)
    value: (N, VC, H, W) or (N, VC, Lv)
    query: (N, QC, L)        with QC == VC
    returns: (N, KC, Lv)
    """
    n = key.shape[0]
    key3 = key.reshape(n, key.shape[1], -1)              # (N, KC, L)
    value3 = value.reshape(n, value.shape[1], -1)        # (N, VC, Lv)
    kc, l = key3.shape[1], key3.shape[2]
    vc, lv = value3.shape[1], value3.shape[2]
    qc = query.shape[1]
    assert query.shape == (n, qc, l), (query.shape, (n, qc, l))
    assert qc == vc, "bmm(sim, value) requires query channels == value channels"

    out_dtype = jnp.result_type(key3.dtype, query.dtype, value3.dtype)

    # L (contraction) tile: lane multiple, capped so key/query blocks stay
    # bounded as resolution grows.  Zero-pad L up to a tile multiple only when
    # needed (zero lanes contribute zero to sim); Lv / output stay unpadded.
    tl = min(_round_up(l, _LANE), _L_TILE_CAP)
    lp = _round_up(l, tl)
    if lp != l:
        key3 = jnp.pad(key3, ((0, 0), (0, 0), (0, lp - l)))
        query = jnp.pad(query, ((0, 0), (0, 0), (0, lp - l)))
    n_l = lp // tl

    # Generation-specific VMEM budgets.
    cap = _vmem_capacity_bytes()
    budget = int(cap * 0.40)                       # double-buffered working set
    vmem_limit = min(int(cap * 0.75), 100 * 1024 * 1024)
    two_tc = cap <= 64 * 1024 * 1024               # v7x heuristic (2 TCs/chip)

    # Per-batch-element VMEM footprint of one grid step: every pipelined
    # operand (inputs AND output) is double-buffered; scratch is single.
    per_batch = (2 * _tile_bytes(kc, tl, key3.dtype)       # key
                 + 2 * _tile_bytes(qc, tl, query.dtype)    # query
                 + 2 * _tile_bytes(qc, lv, value3.dtype)   # value
                 + 2 * _tile_bytes(kc, lv, out_dtype)      # output
                 + _tile_bytes(kc, qc, jnp.float32))       # sim accumulator
    bt = _choose_batch_tile(n, per_batch, budget, two_tc)
    grid = (n // bt, n_l)

    out = pl.pallas_call(
        _attention_kernel,
        out_shape=jax.ShapeDtypeStruct((n, kc, lv), out_dtype),
        grid_spec=pltpu.PrefetchScalarGridSpec(
            num_scalar_prefetch=0,
            grid=grid,
            in_specs=[
                pl.BlockSpec((bt, kc, tl), lambda b, li: (b, 0, li)),   # key
                pl.BlockSpec((bt, qc, tl), lambda b, li: (b, 0, li)),   # query
                pl.BlockSpec((bt, qc, lv), lambda b, li: (b, 0, 0)),    # value
            ],
            out_specs=pl.BlockSpec((bt, kc, lv), lambda b, li: (b, 0, 0)),
            scratch_shapes=[pltpu.VMEM((bt, kc, qc), jnp.float32)],
        ),
        compiler_params=pltpu.CompilerParams(
            dimension_semantics=("parallel", "arbitrary"),
            vmem_limit_bytes=vmem_limit,
        ),
    )(key3, query, value3)
    return out


def _reference(key, value, query):
    """Pure-JAX mirror of the PyTorch forward for validation."""
    n = key.shape[0]
    key3 = key.reshape(n, key.shape[1], -1).astype(jnp.float32)
    value3 = value.reshape(n, value.shape[1], -1).astype(jnp.float32)
    q_perm = jnp.transpose(query.astype(jnp.float32), (0, 2, 1))   # (N, L, QC)
    vc = value3.shape[1]                       # torch rebinds KC to value.shape[1]
    sim = jnp.einsum("nkl,nlq->nkq", key3, q_perm,
                     precision=jax.lax.Precision.HIGHEST)          # (N, KC, QC)
    sim = vc ** (-0.5) * sim
    sim = jax.nn.softmax(sim, axis=1)                              # over KC
    return jnp.einsum("nkq,nql->nkl", sim, value3,
                      precision=jax.lax.Precision.HIGHEST)         # (N, KC, Lv)


if __name__ == "__main__":
    # Small shapes: N=4 batches, channels=8, spatial 8x16 -> L = Lv = 128.
    N, KC, QC, H, W = 4, 8, 8, 8, 16
    L = H * W

    k0, k1, k2 = jax.random.split(jax.random.PRNGKey(0), 3)
    key = jax.random.normal(k0, (N, KC, H, W), dtype=jnp.float32)
    value = jax.random.normal(k1, (N, QC, H, W), dtype=jnp.float32)
    query = jax.random.normal(k2, (N, QC, L), dtype=jnp.float32)

    out = jax.block_until_ready(attention_block(key, value, query))
    ref = _reference(key, value, query)

    assert out.shape == (N, KC, L), out.shape
    max_err = float(jnp.max(jnp.abs(out.astype(jnp.float32) - ref)))
    assert jnp.allclose(out.astype(jnp.float32), ref, atol=2e-3, rtol=2e-3), (
        f"mismatch vs reference, max abs err = {max_err}")

    print("KERNEL_OK")
</pallas_src>

<mosaic_0001>
module attributes {stable_mosaic.version = 11 : i64} {
  func.func @_attention_kernel(%arg0: i32, %arg1: i32, %arg2: memref<2x8x128xf32, #tpu.memory_space<vmem>>, %arg3: memref<2x8x128xf32, #tpu.memory_space<vmem>>, %arg4: memref<2x8x128xf32, #tpu.memory_space<vmem>>, %arg5: memref<2x8x128xf32, #tpu.memory_space<vmem>>, %arg6: memref<2x8x8xf32, #tpu.memory_space<vmem>>) attributes {dimension_semantics = [#tpu.dimension_semantics<parallel>, #tpu.dimension_semantics<arbitrary>], iteration_bounds = array<i64: 2, 1>, scalar_prefetch = 0 : i64, scratch_operands = 1 : i64, tpu.core_type = #tpu.core_type<tc>, window_params = [{transform_indices = @transform_0, window_bounds = array<i64: 2, 8, 128>}, {transform_indices = @transform_1, window_bounds = array<i64: 2, 8, 128>}, {transform_indices = @transform_2, window_bounds = array<i64: 2, 8, 128>}, {transform_indices = @transform_3, window_bounds = array<i64: 2, 8, 128>}]} {
    %c0_i32 = arith.constant 0 : i32
    %0 = arith.cmpi eq, %arg1, %c0_i32 : i32
    %1 = arith.extui %0 : i1 to i32
    %c0_i32_0 = arith.constant 0 : i32
    %2 = arith.cmpi ne, %1, %c0_i32_0 : i32
    scf.if %2 {
      %cst_14 = arith.constant 0.000000e+00 : f32
      %12 = vector.broadcast %cst_14 : f32 to vector<2x8x8xf32>
      %c0_15 = arith.constant 0 : index
      %c0_16 = arith.constant 0 : index
      %c0_17 = arith.constant 0 : index
      %13 = vector.load %arg6[%c0_15, %c0_16, %c0_17] : memref<2x8x8xf32, #tpu.memory_space<vmem>>, vector<2x8x8xf32>
      tpu.vector_store %arg6[%c0_15, %c0_16, %c0_17], %12 {strides = array<i32>} : memref<2x8x8xf32, #tpu.memory_space<vmem>>, vector<2x8x8xf32>,
    } else {
    }
    %c0 = arith.constant 0 : index
    %c0_1 = arith.constant 0 : index
    %c0_2 = arith.constant 0 : index
    %3 = vector.load %arg6[%c0, %c0_1, %c0_2] : memref<2x8x8xf32, #tpu.memory_space<vmem>>, vector<2x8x8xf32>
    %c0_3 = arith.constant 0 : index
    %c0_4 = arith.constant 0 : index
    %c0_5 = arith.constant 0 : index
    %4 = vector.load %arg2[%c0_3, %c0_4, %c0_5] : memref<2x8x128xf32, #tpu.memory_space<vmem>>, vector<2x8x128xf32>
    %c0_6 = arith.constant 0 : index
    %c0_7 = arith.constant 0 : index
    %c0_8 = arith.constant 0 : index
    %5 = vector.load %arg3[%c0_6, %c0_7, %c0_8] : memref<2x8x128xf32, #tpu.memory_space<vmem>>, vector<2x8x128xf32>
    "tpu.trace_start"() <{level = 10 : i32, message = "bkl,bql->bkq"}> : () -> ()
    %cst = arith.constant dense<0.000000e+00> : vector<2x8x8xf32>
    %6 = tpu.matmul %4, %5, %cst {dimension_numbers = #tpu.dot_dimension_numbers<[2], [2], [1], [1], [0, 0, 0, 1, 1, 1], [0], [0]>} : vector<2x8x128xf32>, vector<2x8x128xf32>, vector<2x8x8xf32> -> vector<2x8x8xf32>
    "tpu.trace_stop"() : () -> ()
    %7 = arith.addf %3, %6 : vector<2x8x8xf32>
    %c0_9 = arith.constant 0 : index
    %c0_10 = arith.constant 0 : index
    %c0_11 = arith.constant 0 : index
    %8 = vector.load %arg6[%c0_9, %c0_10, %c0_11] : memref<2x8x8xf32, #tpu.memory_space<vmem>>, vector<2x8x8xf32>
    tpu.vector_store %arg6[%c0_9, %c0_10, %c0_11], %7 {strides = array<i32>} : memref<2x8x8xf32, #tpu.memory_space<vmem>>, vector<2x8x8xf32>,
    %c0_i32_12 = arith.constant 0 : i32
    %9 = arith.cmpi eq, %arg1, %c0_i32_12 : i32
    %10 = arith.extui %9 : i1 to i32
    %c0_i32_13 = arith.constant 0 : i32
    %11 = arith.cmpi ne, %10, %c0_i32_13 : i32
    scf.if %11 {
      %c0_14 = arith.constant 0 : index
      %c0_15 = arith.constant 0 : index
      %c0_16 = arith.constant 0 : index
      %12 = vector.load %arg6[%c0_14, %c0_15, %c0_16] : memref<2x8x8xf32, #tpu.memory_space<vmem>>, vector<2x8x8xf32>
      %c0_17 = arith.constant 0 : index
      %c0_18 = arith.constant 0 : index
      %c0_19 = arith.constant 0 : index
      %13 = vector.load %arg4[%c0_17, %c0_18, %c0_19] : memref<2x8x128xf32, #tpu.memory_space<vmem>>, vector<2x8x128xf32>
      %cst_20 = arith.constant dense<0xFF800000> : vector<2x8xf32>
      %14 = vector.multi_reduction <maximumf>, %12, %cst_20 [1] : vector<2x8x8xf32> to vector<2x8xf32>
      %15 = vector.shape_cast %14 : vector<2x8xf32> to vector<2x1x8xf32>
      %16 = vector.broadcast %15 : vector<2x1x8xf32> to vector<2x8x8xf32>
      %17 = arith.subf %12, %16 : vector<2x8x8xf32>
      %cst_21 = arith.constant 0.353553385 : f32
      %18 = vector.broadcast %cst_21 : f32 to vector<2x8x8xf32>
      %19 = arith.mulf %17, %18 : vector<2x8x8xf32>
      %20 = math.exp %19 : vector<2x8x8xf32>
      %cst_22 = arith.constant dense<0.000000e+00> : vector<2x8xf32>
      %21 = vector.multi_reduction <add>, %20, %cst_22 [1] : vector<2x8x8xf32> to vector<2x8xf32>
      %22 = vector.shape_cast %21 : vector<2x8xf32> to vector<2x1x8xf32>
      %23 = vector.broadcast %22 : vector<2x1x8xf32> to vector<2x8x8xf32>
      %24 = arith.divf %20, %23 : vector<2x8x8xf32>
      "tpu.trace_start"() <{level = 10 : i32, message = "bkq,bqv->bkv"}> : () -> ()
      %cst_23 = arith.constant dense<0.000000e+00> : vector<2x8x128xf32>
      %25 = tpu.matmul %24, %13, %cst_23 {dimension_numbers = #tpu.dot_dimension_numbers<[2], [1], [1], [2], [0, 0, 0, 1, 1, 2], [0], [0]>} : vector<2x8x8xf32>, vector<2x8x128xf32>, vector<2x8x128xf32> -> vector<2x8x128xf32>
      "tpu.trace_stop"() : () -> ()
      %c0_24 = arith.constant 0 : index
      %c0_25 = arith.constant 0 : index
      %c0_26 = arith.constant 0 : index
      %26 = vector.load %arg5[%c0_24, %c0_25, %c0_26] : memref<2x8x128xf32, #tpu.memory_space<vmem>>, vector<2x8x128xf32>
      tpu.vector_store %arg5[%c0_24, %c0_25, %c0_26], %25 {strides = array<i32>} : memref<2x8x128xf32, #tpu.memory_space<vmem>>, vector<2x8x128xf32>,
    } else {
    }
    return
  }
  func.func @transform_0(%arg0: i32, %arg1: i32) -> (i32, i32, i32) {
    %c0_i32 = arith.constant 0 : i32
    %c0_i32_0 = arith.constant 0 : i32
    return %arg0, %c0_i32, %arg1 : i32, i32, i32
  }
  func.func @transform_1(%arg0: i32, %arg1: i32) -> (i32, i32, i32) {
    %c0_i32 = arith.constant 0 : i32
    %c0_i32_0 = arith.constant 0 : i32
    return %arg0, %c0_i32, %arg1 : i32, i32, i32
  }
  func.func @transform_2(%arg0: i32, %arg1: i32) -> (i32, i32, i32) {
    %c0_i32 = arith.constant 0 : i32
    %c0_i32_0 = arith.constant 0 : i32
    %c0_i32_1 = arith.constant 0 : i32
    return %arg0, %c0_i32, %c0_i32_0 : i32, i32, i32
  }
  func.func @transform_3(%arg0: i32, %arg1: i32) -> (i32, i32, i32) {
    %c0_i32 = arith.constant 0 : i32
    %c0_i32_0 = arith.constant 0 : i32
    %c0_i32_1 = arith.constant 0 : i32
    return %arg0, %c0_i32, %c0_i32_0 : i32, i32, i32
  }
}

</mosaic_0001>

<bundles_post_ra>
// kernel: attention_block.1
= control target key start
LH: loop header
LB: loop body
LE: loop exit
PB: predicated region body
PF: predicated region fallthrough
CT: control target
= control target key end

     0   :  { %8 = vsyncpa [#allocation4], 0  ;;  %s1071_s0 = inlined_call_operand.vmem [shape: f32[4,8,128], index: 0, kind: input, shape index: {}]   ;;  %s1072_s1 = inlined_call_operand.vmem [shape: f32[4,8,128], index: 1, kind: input, shape index: {}]   ;;  %s1073_s2 = inlined_call_operand.vmem [shape: f32[4,8,128], index: 2, kind: input, shape index: {}]   ;;  %s1074_s3 = inlined_call_operand.hbm [shape: f32[4,8,128], index: 3, kind: output, shape index: {}]  }
   0x1   :  { %10 = vsyncpa [#allocation4 + $0x1], 0  ;;  %s937_s12 = smov 0   ;;  %s939_s13 = smov 0  }
   0x2   :  { %s941_s14 = smov 0   ;;  %s943_s15 = smov 0  }
   0x3   :  { %s945_s16 = smov 0   ;;  %s947_s17 = smov 0  }
   0x4 LB: > { %s717_s18 = sadd.s32 4294967295, %s910_s17   ;;  %s718_s19 = sadd.s32 4294967294, %s910_s17   ;;  %s910_s17 = sphi %s947_s17, %s16_s17   ;;  %s906_s16 = sphi %s945_s16, %s1081_s16   ;;  %s902_s15 = sphi %s943_s15, %s1080_s15   ;;  %s898_s14 = sphi %s941_s14, %s1079_s14   ;;  %s894_s13 = sphi %s939_s13, %s1078_s13   ;;  %s890_s12 = sphi %s937_s12, %s1077_s12  }
   0x5   : > { %s28_s20 = sadd.s32 1, %s906_s16  ;;  %s117_s21 = sadd.s32 1, %s898_s14 }
   0x6   : > { %p30_p0 = scmp.ge.s32.totalorder %s28_s20, 2  ;;  %p127_p1 = scmp.ne.s32.totalorder %s898_s14, %s894_s13 }
   0x7   : > { %p128_p2 = scmp.eq.s32.totalorder %s717_s18, 1  ;;  %p133_p3 = scmp.ne.s32.totalorder %s894_s13, %s890_s12 }
   0x8   : > { %s1083_s20 = smov (%p30_p0, %s28_s20), 0  ;;  %p134_p5 = scmp.eq.s32.totalorder %s718_s19, 1 }
   0x9   : > { %p977_p4 = por %p128_p2, %p127_p1  ;;  %s114_s23 = ssub.s32 %s906_s16, %s1083_s20 }
   0xa   : > { %p721_p6 = scmp.ge.s32.totalorder %s910_s17, 1  ;;  %p115_p7 = scmp.eq.s32.totalorder %s114_s23, 0 }
   0xb   : > { %p984_p8 = por %p134_p5, %p133_p3  ;;  %p185_p9 = scmp.lt.s32.totalorder %s910_s17, 3 }
   0xc   : > { %s990_s25 = scalar_select %p115_p7, %s898_s14, %s117_s21  }
   0xd   : > { %p186_p10 = pnand %p721_p6, %p185_p9 }
   0xe   : > { %s723_s26 = sshll.u32 (!%p186_p10), %s902_s15, 1  ;;  %vm254_vm0 = vcmask (!%p186_p10), 64512   ;;  %v912_v0 = vmov (!%p186_p10), 0.0   ;;  %vm913_vm1 = vmmov (!%p186_p10), 0   ;;  %s222_s10 = sand.u32 (!%p186_p10), 1, %s894_s13  }
   0xf   : > { %189 = sbr.rel (%p186_p10) target bundleno = 535 (0x217), region = 32  ;;  %745 = vmatprep.subr.mxu0 (!%p186_p10), %v912_v0  ;;  %750 = vmatprep.subr.mxu1 (!%p186_p10), %v912_v0  ;;  %p226_p11 = scmp.lt.s32.totalorder (!%p186_p10), %s723_s26, 3  ;;  %255 = vst.msk [vmem:[#allocation2] sm:$0xff] (!%p186_p10), %vm254_vm0, %v912_v0  ;;  %256 = vst.msk [vmem:[#allocation2 + $0x8] sm:$0xff] (!%p186_p10), %vm254_vm0, %v912_v0 }
  0x10   : > { %747 = vmatprep.mubr.msk.f32.mxu0 (!%p186_p10), %vm913_vm1, %v912_v0  ;;  %752 = vmatprep.mubr.msk.f32.mxu1 (!%p186_p10), %vm913_vm1, %v912_v0  ;;  %s722_s11 = sshll.u32 (!%p186_p10), %s222_s10, 4  ;;  %s736_s21 = sshll.u32 (!%p186_p10), %s902_s15, 8 }
  0x11   : > { %s224_s18 = scalar_lea.vmem (!%p186_p10), [#allocation3], %s722_s11  ;;  %s1025_s28 = scalar_lea.sflag (!%p186_p10), [#allocation4], %s222_s10 }
  0x12   : > { %s617_s19 = sshll.u32 (!%p186_p10), %s224_s18, 4  ;;  %s914_s15 = smov (!%p186_p10), [#allocation3]   ;;  %s1018_s19 = int_to_ptr.vmem [resolvable:$true] %s617_s19 }
  0x13   : > { %s832_s29 = scalar_lea.vmem (!%p186_p10), %s1018_s19, 256 }
  0x14   : > { %p833_p12 = scmp.ne.s32.totalorder (!%p186_p10), %s1018_s19, %s832_s29 }
  0x16   : > { %s1085_s26 = smov (!%p226_p11, %s723_s26), 3  ;;  %v257_v7 = vld [vmem:[#allocation2] sm:$0xff]  ;;  %v258_v8 = vld [vmem:[#allocation2 + $0x8] sm:$0xff]  ;;  %p834_p13 = pnand %p833_p12, %p977_p4 }
  0x17   : > { %s724_s27 = sshll.u32 %s1085_s26, 3 }
  0x18   : > { %s241_s30 = scalar_lea.vmem %s1072_s1, %s724_s27  ;;  %s232_s6 = scalar_lea.vmem %s1071_s0, %s724_s27 }
  0x19   : > { %v261_v1 = vld [vmem:[%s241_s30] sm:$0xff]  ;;  %v262_v2 = vld [vmem:[%s241_s30 + $0x8] sm:$0xff]  ;;  %s247_s9 = scalar_lea.vmem %s1073_s2, %s724_s27  ;;  %s1023_s27 = scalar_lea.hbm %s1074_s3, %s736_s21 }
  0x1a   : > { %746 = vmatpush3.xpose.msra.mxu0 %v261_v1  ;;  %751 = vmatpush3.xpose.msra.mxu1 %v262_v2  ;;  %v259_v3 = vld [vmem:[%s232_s6] sm:$0xff]  ;;  %v260_v4 = vld [vmem:[%s232_s6 + $0x8] sm:$0xff]  ;;  %p835_p0 = pneg %p834_p13  ;;  %s836_s30 = sshll.u32 %s914_s15, 4  ;;  %s837_s30 = int_to_ptr.vmem [resolvable:$false] %s836_s30 }
  0x1b   : > { %755 = vmatprep.subr.mxu0 %v912_v0  ;;  %760 = vmatprep.subr.mxu1 %v912_v0  ;;  %v413_v5 = vld [vmem:[%s247_s9] sm:$0xff]  ;;  %v414_v6 = vld [vmem:[%s247_s9 + $0x8] sm:$0xff]  ;;  %s838_s4 = scalar_lea.vmem %s837_s30, 512  ;;  %p839_p1 = scmp.lt.s32.totalorder %s1018_s19, %s837_s30 }
  0x1c   : > { %p840_p2 = scmp.lt.s32.totalorder %s838_s4, %s832_s29 }
  0x1d   : > { %748 = vmatmul.mubr.f32.vlgmr.msra.gmra.mrb[0].mxu0 %v259_v3  ;;  %753 = vmatmul.mubr.f32.vlgmr.msra.gmra.mrb[0].mxu1 %v260_v4 }
  0x1e   : > { %757 = vmatprep.mubr.msk.f32.mxu0 %vm913_vm1, %v912_v0  ;;  %762 = vmatprep.mubr.msk.f32.mxu1 %vm913_vm1, %v912_v0  ;;  %p841_p3 = por %p840_p2, %p839_p1 }
  0x1f   : > { %756 = vmatpush3.msra.mxu0 %v413_v5  ;;  %761 = vmatpush3.msra.mxu1 %v414_v6 }
  0x20   : > { %p842_p5 = pnand %p841_p3, %p835_p0 }
  0xf0   : > { %v329_v9 = vpop.f32.mrb[0].mxu0  ;;  %v399_v10 = vpop.f32.mrb[0].mxu1 }
  0xf1   : > { %v403_v11 = vadd.f32 %v329_v9, %v257_v7  ;;  %v404_v12 = vadd.f32 %v399_v10, %v258_v8  ;;  %v749_v13 = vpop.f32.mrb[1].mxu0  ;;  %v754_v14 = vpop.f32.mrb[1].mxu1 }
  0xf3   : > { %406 = vst.msk [vmem:[#allocation2] sm:$0xff] %vm254_vm0, %v403_v11  ;;  %407 = vst.msk [vmem:[#allocation2 + $0x8] sm:$0xff] %vm254_vm0, %v404_v12 }
  0xfa   : > { %v411_v15 = vld [vmem:[#allocation2] sm:$0xff]  ;;  %v412_v16 = vld [vmem:[#allocation2 + $0x8] sm:$0xff] }
  0xfb   : > { %v415_v17 = vsel %vm254_vm0, %v411_v15, -inf  ;;  %v422_v18 = vsel %vm254_vm0, %v412_v16, -inf }
  0xfc   : > { %v416_v19 = vrot.slane %v415_v17, 4  ;;  %v423_v20 = vrot.slane %v422_v18, 4 }
  0xfe   : > { %v417_v21 = vmax.f32 %v415_v17, %v416_v19  ;;  %v424_v22 = vmax.f32 %v422_v18, %v423_v20 }
 0x100   : > { %v418_v23 = vrot.slane %v417_v21, 2  ;;  %v425_v24 = vrot.slane %v424_v22, 2 }
 0x102   : > { %v419_v25 = vmax.f32 %v417_v21, %v418_v23  ;;  %v426_v26 = vmax.f32 %v424_v22, %v425_v24 }
 0x104   : > { %v420_v27 = vrot.slane %v419_v25, 1  ;;  %v427_v28 = vrot.slane %v426_v26, 1 }
 0x106   : > { %v421_v29 = vmax.f32 %v419_v25, %v420_v27  ;;  %v428_v30 = vmax.f32 %v426_v26, %v427_v28 }
 0x108   : > { %v429_v31 = vsub.f32 %v411_v15, %v421_v29  ;;  %v430_v32 = vsub.f32 %v412_v16, %v428_v30 }
 0x10a   : > { %v431_v33 = vmul.f32 0.35355338, %v429_v31  ;;  %v432_v34 = vmul.f32 0.35355338, %v430_v32 }
 0x10c   : > { %v433_v35 = vmul.f32 1.442695, %v431_v33  ;;  %v435_v36 = vmul.f32 1.442695, %v432_v34 }
 0x10e   : > { %824 = vpow2.f32 %v433_v35 }
 0x10f   : > { %826 = vpow2.f32 %v435_v36 }
 0x118   : > { %v825_v37 = vpop.eup %824 }
 0x119   : > { %v827_v38 = vpop.eup %826  ;;  %v437_v39 = vsel %vm254_vm0, %v825_v37, 0.0 }
 0x11a   : > { %v438_v40 = vrot.slane %v437_v39, 4  ;;  %v444_v41 = vsel %vm254_vm0, %v827_v38, 0.0 }
 0x11b   : > { %v445_v42 = vrot.slane %v444_v41, 4 }
 0x11c   : > { %v439_v43 = vadd.f32 %v438_v40, %v437_v39 }
 0x11d   : > { %v446_v44 = vadd.f32 %v445_v42, %v444_v41 }
 0x11e   : > { %v440_v45 = vrot.slane %v439_v43, 2 }
 0x11f   : > { %v447_v46 = vrot.slane %v446_v44, 2 }
 0x120   : > { %v441_v47 = vadd.f32 %v440_v45, %v439_v43 }
 0x121   : > { %v448_v48 = vadd.f32 %v447_v46, %v446_v44 }
 0x122   : > { %v442_v49 = vrot.slane %v441_v47, 1 }
 0x123   : > { %v449_v50 = vrot.slane %v448_v48, 1 }
 0x124   : > { %v443_v51 = vadd.f32 %v442_v49, %v441_v47 }
 0x125   : > { %v450_v52 = vadd.f32 %v449_v50, %v448_v48 }
 0x126   : > { %828 = vrcp.f32 %v443_v51 }
 0x127   : > { %830 = vrcp.f32 %v450_v52 }
 0x130   : > { %v829_v53 = vpop.eup %828 }
 0x131   : > { %v831_v54 = vpop.eup %830  ;;  %v452_v55 = vmul.f32 %v829_v53, %v825_v37 }
 0x132   : > { %v454_v56 = vmul.f32 %v831_v54, %v827_v38 }
 0x133   : > { %758 = vmatmul.mubr.msk.f32.vlgmr.msra.gmra.mrb[2].mxu0 %vm254_vm0, %v452_v55 }
 0x134   : > { %763 = vmatmul.mubr.msk.f32.vlgmr.msra.gmra.mrb[2].mxu1 %vm254_vm0, %v454_v56 }
 0x206   : > { %v524_v57 = vpop.f32.mrb[2].mxu0 }
 0x207   : > { %601 = vst [vmem:[%s224_s18] sm:$0xff] %v524_v57  ;;  %v597_v58 = vpop.f32.mrb[2].mxu1  ;;  %v759_v59 = vpop.f32.mrb[3].mxu0 }
 0x208   : > { %602 = vst [vmem:[%s224_s18 + $0x8] sm:$0xff] %v597_v58  ;;  %v764_v60 = vpop.f32.mrb[3].mxu1 }
 0x209   : > { %845 = shalt.err (!%p842_p5)
}
 0x20a   : > { %s846_s5 = scalar_lea.hbm %s1023_s27, 256  ;;  %s850_s8 = scalar_lea.hbm %s1074_s3, 512 }
 0x20b   : > { %p847_p6 = scmp.ne.s32.totalorder %s1023_s27, %s846_s5  ;;  %p851_p10 = scmp.lt.u32.totalorder %s1023_s27, %s1074_s3 }
 0x20c   : > { %p852_p11 = scmp.lt.u32.totalorder %s850_s8, %s846_s5  ;;  %p854_p13 = scmp.lt.u32.totalorder %s846_s5, %s1023_s27 }
 0x20d   : > { %p848_p7 = pnand %p847_p6, %p977_p4 }
 0x20e   : > { %p853_p12 = por %p852_p11, %p851_p10 }
 0x20f   : > { %p849_p9 = pneg %p848_p7 }
 0x210   : > { %p855_p0 = por %p854_p13, %p853_p12 }
 0x212   : > { %p856_p1 = pnand %p855_p0, %p849_p9 }
 0x214   : > { %859 = shalt.err (!%p856_p1)
}
 0x215   : > { %s915_s11 = smov 128   ;;  %s916_s18 = smov 8  }
 0x216   : > { %765 = dma.vmem_to_hbm [thread:$0]  (%p977_p4), %s1018_s19, 256, %s1023_s27, %s1025_s28, %s915_s11, %s915_s11, %s916_s18  }
 0x217 PF: > { %p771_p2 = scmp.ge.s32.totalorder %s910_s17, 2  ;;  %s632_s21 = sand.u32 1, %s890_s12  }
 0x218   : > { %s633_s23 = scalar_lea.sflag [#allocation4], %s632_s21 }
 0x219   : > { %p768_p3 = pnand %p771_p2, %p984_p8 }
 0x21b   : > { %885 = dma.done.wait (!%p768_p3), %s633_s23, 256  }
 0x21c   : > { %887 = vsyncadd (!%p768_p3), %s633_s23, 4294967040  ;;  %s16_s17 = sadd.s32 1, %s910_s17   ;;  %s1077_s12 = smov %s894_s13 }
 0x21d   : > { %p13_p5 = scmp.ge.s32.totalorder %s16_s17, 4   ;;  %s1078_s13 = smov %s898_s14 }
 0x21e   : > { %s1079_s14 = smov %s990_s25  ;;  %s1080_s15 = smov %s906_s16 }
 0x21f   : > { %s1081_s16 = smov %s1083_s20  ;;  %15 = sbr.rel (!%p13_p5) target bundleno = 4 (0x4), region = 81 }
 0x226   :  { %638 = vsyncpa [#allocation4], 1 }
 0x227   :  { %640 = vsyncpa [#allocation4 + $0x1], 1 }

</bundles_post_ra>
